<compile_context>
chip_gen: v7x
topology: tpu7x:2x2x1
jax: 0.10.0
libtpu: 0.0.40
codegen_flags: <defaults>
</compile_context>

<pallas_src>
import functools

import jax
import jax.numpy as jnp
from jax.experimental import pallas as pl
from jax.experimental.pallas import tpu as pltpu

_F32_EPS = float(jnp.finfo(jnp.float32).eps)


# ---------------------------------------------------------------------------
# Tile-size / VMEM budgeting
# ---------------------------------------------------------------------------
def _vmem_budget_bytes():
    cap = 64 * 1024 * 1024  # conservative default (v7x physical VMEM per core)
    try:
        info = pltpu.get_tpu_info()
        cap = int(getattr(info, "vmem_capacity_bytes", cap))
    except Exception:
        pass
    return (cap * 3) // 4  # leave headroom for compiler-managed temporaries


def _pick_row_tile(n, c, itemsize, budget):
    """Row tile sized in bytes: ~2-4 MiB per input block, keeping the
    double-buffered working set (2 inputs x 2 buffers + ~4 f32 temporaries)
    well inside `budget`."""
    mult = 8 * max(1, 4 // max(1, itemsize))       # sublane packing for dtype
    target_block_bytes = min(4 * 1024 * 1024, budget // 12)
    tn = target_block_bytes // max(1, c * itemsize)
    n_cap = ((n + mult - 1) // mult) * mult        # don't tile past the batch
    tn = min(max(mult, (tn // mult) * mult), n_cap)
    return tn


# ---------------------------------------------------------------------------
# Kernels
# ---------------------------------------------------------------------------
def _tile_loss(x_ref, t_ref, *, ignore_index, normalize_targets, num_classes):
    """Per-row loss for one (tn, C) tile. Returns (per (tn,1) f32, vmask|None)."""
    x = x_ref[...].astype(jnp.float32)
    t = t_ref[...].astype(jnp.float32)

    ignore_active = 0 <= ignore_index <= num_classes - 1
    if ignore_active:
        drop = t[:, ignore_index:ignore_index + 1] > 0.0
        vmask = jnp.where(drop, 0.0, 1.0)              # (tn, 1)
        vt = t * vmask
    else:
        vmask = None
        vt = t                                          # dead mask path skipped

    if normalize_targets:
        vt = vt / (_F32_EPS + jnp.sum(vt, axis=-1, keepdims=True))

    # Stable log-softmax folded into the loss without materializing it:
    #   per = sum(vt) * (m + log(sum(exp(x - m)))) - sum(vt * x)
    m = jnp.max(x, axis=-1, keepdims=True)
    lse = jnp.log(jnp.sum(jnp.exp(x - m), axis=-1, keepdims=True))
    per = (m + lse) * jnp.sum(vt, axis=-1, keepdims=True) \
        - jnp.sum(vt * x, axis=-1, keepdims=True)
    return per, vmask


def _mean_kernel(x_ref, t_ref, psum_ref, **kw):
    per, _ = _tile_loss(x_ref, t_ref, **kw)
    psum_ref[...] = jnp.full(psum_ref.shape, jnp.sum(per), dtype=jnp.float32)


def _mean_ignore_kernel(x_ref, t_ref, psum_ref, pcnt_ref, **kw):
    per, vmask = _tile_loss(x_ref, t_ref, **kw)
    psum_ref[...] = jnp.full(psum_ref.shape, jnp.sum(per), dtype=jnp.float32)
    pcnt_ref[...] = jnp.full(pcnt_ref.shape, jnp.sum(vmask), dtype=jnp.float32)


def _none_kernel(x_ref, t_ref, per_ref, **kw):
    per, _ = _tile_loss(x_ref, t_ref, **kw)
    per_ref[...] = per


# ---------------------------------------------------------------------------
# Wrapper
# ---------------------------------------------------------------------------
def soft_target_cross_entropy(logits, targets, *, ignore_index=-100,
                              reduction="mean", normalize_targets=False):
    """Pallas implementation of SoftTargetCrossEntropyLoss.forward."""
    if reduction not in ("mean", "none"):
        raise NotImplementedError(f'reduction type "{reduction}" not implemented')

    if targets.ndim == 1:
        assert logits.shape[0] == targets.shape[0], "batch size mismatch"
        targets = jax.nn.one_hot(targets, logits.shape[1], dtype=logits.dtype)
    assert logits.shape == targets.shape

    N, C = logits.shape
    ignore_active = 0 <= ignore_index <= C - 1

    budget = _vmem_budget_bytes()
    itemsize = max(jnp.dtype(logits.dtype).itemsize,
                   jnp.dtype(targets.dtype).itemsize)
    tn = _pick_row_tile(N, C, itemsize, budget)
    n_pad = pl.cdiv(N, tn) * tn
    if n_pad != N:
        pad = n_pad - N
        logits = jnp.pad(logits, ((0, pad), (0, 0)))
        targets = jnp.pad(targets, ((0, pad), (0, 0)))
        if ignore_active and reduction == "mean":
            # Padded rows get a positive ignore-class target -> dropped from
            # both the loss sum (vt == 0) and the valid-sample count.
            targets = targets.at[N:, ignore_index].set(
                jnp.asarray(1, targets.dtype))
    num_tiles = n_pad // tn

    kw = dict(ignore_index=ignore_index, normalize_targets=normalize_targets,
              num_classes=C)
    in_specs = [pl.BlockSpec((tn, C), lambda i: (i, 0)),
                pl.BlockSpec((tn, C), lambda i: (i, 0))]
    cparams = pltpu.CompilerParams(dimension_semantics=("parallel",),
                                   vmem_limit_bytes=budget)

    if reduction == "none":
        per = pl.pallas_call(
            functools.partial(_none_kernel, **kw),
            out_shape=jax.ShapeDtypeStruct((n_pad, 1), jnp.float32),
            grid_spec=pltpu.PrefetchScalarGridSpec(
                num_scalar_prefetch=0, grid=(num_tiles,),
                in_specs=in_specs,
                out_specs=pl.BlockSpec((tn, 1), lambda i: (i, 0))),
            compiler_params=cparams,
        )(logits, targets)
        return per[:N, 0]

    # reduction == "mean": per-tile lane-dense partials, reduced in the wrapper.
    partial_shape = jax.ShapeDtypeStruct((num_tiles, 8, 128), jnp.float32)
    partial_spec = pl.BlockSpec((1, 8, 128), lambda i: (i, 0, 0))

    if ignore_active:
        psum, pcnt = pl.pallas_call(
            functools.partial(_mean_ignore_kernel, **kw),
            out_shape=(partial_shape, partial_shape),
            grid_spec=pltpu.PrefetchScalarGridSpec(
                num_scalar_prefetch=0, grid=(num_tiles,),
                in_specs=in_specs,
                out_specs=[partial_spec, partial_spec]),
            compiler_params=cparams,
        )(logits, targets)
        denom = jnp.maximum(jnp.sum(pcnt[:, 0, 0]), 1.0)
        return jnp.sum(psum[:, 0, 0]) / denom

    psum = pl.pallas_call(
        functools.partial(_mean_kernel, **kw),
        out_shape=partial_shape,
        grid_spec=pltpu.PrefetchScalarGridSpec(
            num_scalar_prefetch=0, grid=(num_tiles,),
            in_specs=in_specs, out_specs=partial_spec),
        compiler_params=cparams,
    )(logits, targets)
    # ignore_index inactive => every (original) row is a valid sample.
    return jnp.sum(psum[:, 0, 0]) / jnp.float32(max(N, 1))


# ---------------------------------------------------------------------------
# Pure-JAX reference (mirrors the PyTorch module)
# ---------------------------------------------------------------------------
def _reference(logits, targets, *, ignore_index=-100, reduction="mean",
               normalize_targets=False):
    if targets.ndim == 1:
        targets = jax.nn.one_hot(targets, logits.shape[1], dtype=jnp.float32)
    N, C = targets.shape
    vmask = jnp.ones((N, 1), dtype=jnp.float32)
    if 0 <= ignore_index <= C - 1:
        drop = targets[:, ignore_index] > 0
        vmask = jnp.where(drop[:, None], 0.0, vmask)
    vt = targets.astype(jnp.float32) * vmask
    if normalize_targets:
        vt = vt / (_F32_EPS + vt.sum(axis=1, keepdims=True))
    logsm = jax.nn.log_softmax(logits.astype(jnp.float32), axis=-1)
    per = jnp.sum(-vt * logsm, axis=-1)
    if reduction == "mean":
        denom = jnp.maximum(jnp.sum(jnp.sum(vmask, -1) > 0), 1)
        return per.sum() / denom
    return per


if __name__ == "__main__":
    key = jax.random.PRNGKey(0)
    k1, k2, k3, k4 = jax.random.split(key, 4)

    # Case 1: soft (multi-label) targets, default mean reduction + 'none'.
    N, C = 16, 32
    logits = jax.random.normal(k1, (N, C), dtype=jnp.float32)
    targets = jax.nn.softmax(
        2.0 * jax.random.normal(k2, (N, C), dtype=jnp.float32), axis=-1)

    loss = jax.block_until_ready(soft_target_cross_entropy(logits, targets))
    ref = _reference(logits, targets)
    assert jnp.allclose(loss, ref, rtol=1e-5, atol=1e-5), (loss, ref)

    per = jax.block_until_ready(
        soft_target_cross_entropy(logits, targets, reduction="none"))
    per_ref = _reference(logits, targets, reduction="none")
    assert jnp.allclose(per, per_ref, rtol=1e-5, atol=1e-5)

    # Case 2: ragged batch, class-index targets, active ignore_index.
    N2 = 13
    logits2 = jax.random.normal(k3, (N2, C), dtype=jnp.float32)
    tgt_idx = jax.random.randint(k4, (N2,), 0, C)
    loss2 = jax.block_until_ready(
        soft_target_cross_entropy(logits2, tgt_idx, ignore_index=3))
    ref2 = _reference(logits2, tgt_idx, ignore_index=3)
    assert jnp.allclose(loss2, ref2, rtol=1e-5, atol=1e-5), (loss2, ref2)

    # Case 3: normalize_targets with multi-hot targets.
    multi_hot = (jax.random.uniform(k2, (N, C)) > 0.7).astype(jnp.float32)
    loss3 = jax.block_until_ready(
        soft_target_cross_entropy(logits, multi_hot, normalize_targets=True))
    ref3 = _reference(logits, multi_hot, normalize_targets=True)
    assert jnp.allclose(loss3, ref3, rtol=1e-5, atol=1e-5), (loss3, ref3)

    print("KERNEL_OK")
</pallas_src>

<mosaic_0001>
module attributes {stable_mosaic.version = 11 : i64} {
  func.func @_mean_kernel(%arg0: i32, %arg1: memref<16x32xf32, #tpu.memory_space<vmem>>, %arg2: memref<16x32xf32, #tpu.memory_space<vmem>>, %arg3: memref<1x8x128xf32, #tpu.memory_space<vmem>>) attributes {dimension_semantics = [#tpu.dimension_semantics<parallel>], iteration_bounds = array<i64: 1>, scalar_prefetch = 0 : i64, scratch_operands = 0 : i64, tpu.core_type = #tpu.core_type<tc>, window_params = [{transform_indices = @transform_0, window_bounds = array<i64: 16, 32>}, {transform_indices = @transform_1, window_bounds = array<i64: 16, 32>}, {transform_indices = @transform_2, window_bounds = array<i64: 1, 8, 128>}]} {
    %c0 = arith.constant 0 : index
    %c0_0 = arith.constant 0 : index
    %0 = vector.load %arg1[%c0, %c0_0] : memref<16x32xf32, #tpu.memory_space<vmem>>, vector<16x32xf32>
    %c0_1 = arith.constant 0 : index
    %c0_2 = arith.constant 0 : index
    %1 = vector.load %arg2[%c0_1, %c0_2] : memref<16x32xf32, #tpu.memory_space<vmem>>, vector<16x32xf32>
    %cst = arith.constant dense<0xFF800000> : vector<16xf32>
    %2 = vector.multi_reduction <maximumf>, %0, %cst [1] : vector<16x32xf32> to vector<16xf32>
    %3 = vector.shape_cast %2 : vector<16xf32> to vector<16x1xf32>
    %4 = vector.broadcast %3 : vector<16x1xf32> to vector<16x32xf32>
    %5 = arith.subf %0, %4 : vector<16x32xf32>
    %6 = math.exp %5 : vector<16x32xf32>
    %cst_3 = arith.constant dense<0.000000e+00> : vector<16xf32>
    %7 = vector.multi_reduction <add>, %6, %cst_3 [1] : vector<16x32xf32> to vector<16xf32>
    %8 = vector.shape_cast %7 : vector<16xf32> to vector<16x1xf32>
    %9 = math.log %8 : vector<16x1xf32>
    %10 = arith.addf %3, %9 : vector<16x1xf32>
    %cst_4 = arith.constant dense<0.000000e+00> : vector<16xf32>
    %11 = vector.multi_reduction <add>, %1, %cst_4 [1] : vector<16x32xf32> to vector<16xf32>
    %12 = vector.shape_cast %11 : vector<16xf32> to vector<16x1xf32>
    %13 = arith.mulf %10, %12 : vector<16x1xf32>
    %14 = arith.mulf %1, %0 : vector<16x32xf32>
    %cst_5 = arith.constant dense<0.000000e+00> : vector<16xf32>
    %15 = vector.multi_reduction <add>, %14, %cst_5 [1] : vector<16x32xf32> to vector<16xf32>
    %16 = vector.shape_cast %15 : vector<16xf32> to vector<16x1xf32>
    %17 = arith.subf %13, %16 : vector<16x1xf32>
    %18 = vector.shape_cast %17 : vector<16x1xf32> to vector<1x16x1xf32>
    %cst_6 = arith.constant dense<0.000000e+00> : vector<1xf32>
    %19 = vector.multi_reduction <add>, %18, %cst_6 [1, 2] : vector<1x16x1xf32> to vector<1xf32>
    %20 = vector.shape_cast %19 : vector<1xf32> to vector<1x1x1xf32>
    %21 = vector.extract %20[0, 0, 0] : f32 from vector<1x1x1xf32>
    %22 = vector.broadcast %21 : f32 to vector<1x8x128xf32>
    %c0_7 = arith.constant 0 : index
    %c0_8 = arith.constant 0 : index
    %c0_9 = arith.constant 0 : index
    %23 = vector.load %arg3[%c0_7, %c0_8, %c0_9] : memref<1x8x128xf32, #tpu.memory_space<vmem>>, vector<1x8x128xf32>
    tpu.vector_store %arg3[%c0_7, %c0_8, %c0_9], %22 {strides = array<i32>} : memref<1x8x128xf32, #tpu.memory_space<vmem>>, vector<1x8x128xf32>,
    return
  }
  func.func @transform_0(%arg0: i32) -> (i32, i32) {
    %c0_i32 = arith.constant 0 : i32
    %c0_i32_0 = arith.constant 0 : i32
    return %arg0, %c0_i32 : i32, i32
  }
  func.func @transform_1(%arg0: i32) -> (i32, i32) {
    %c0_i32 = arith.constant 0 : i32
    %c0_i32_0 = arith.constant 0 : i32
    return %arg0, %c0_i32 : i32, i32
  }
  func.func @transform_2(%arg0: i32) -> (i32, i32, i32) {
    %c0_i32 = arith.constant 0 : i32
    %c0_i32_0 = arith.constant 0 : i32
    %c0_i32_1 = arith.constant 0 : i32
    return %arg0, %c0_i32, %c0_i32_0 : i32, i32, i32
  }
}

</mosaic_0001>

<bundles_post_ra>
// kernel: tpu_custom_call.1
= control target key start
LH: loop header
LB: loop body
LE: loop exit
PB: predicated region body
PF: predicated region fallthrough
CT: control target
= control target key end

     0   :  { %7 = vsyncpa [#allocation3], 0  ;;  %s269_s0 = inlined_call_operand.hbm [shape: f32[16,32], index: 0, kind: input, shape index: {}]   ;;  %s270_s1 = inlined_call_operand.hbm [shape: f32[16,32], index: 1, kind: input, shape index: {}]   ;;  %s271_s2 = inlined_call_operand.hbm [shape: f32[1,8,128], index: 2, kind: output, shape index: {}]  }
   0x1   :  { %8 = vsyncpa [#allocation6], 0 }
   0x2   :  { %9 = vsyncpa [#allocation4], 0  ;;  %s205_s9 = smov [#allocation2]   ;;  %s133_s13 = scalar_lea.hbm %s269_s0, 256 }
   0x3   :  { %s15_s10 = sshll.u32 %s205_s9, 4  ;;  %p134_p0 = scmp.ne.s32.totalorder %s269_s0, %s133_s13  ;;  %s16_s10 = int_to_ptr.vmem [resolvable:$true] %s15_s10 }
   0x4   :  { %p137_p1 = scmp.lt.u32.totalorder %s133_s13, %s269_s0 }
   0x6   :  { %p139_p2 = pnand %p137_p1, %p134_p0 }
   0x8   :  { %142 = shalt.err (!%p139_p2)
}
   0x9   :  { %s143_s18 = scalar_lea.vmem %s16_s10, 256  ;;  %p148_p4 = scmp.lt.s32.totalorder %s16_s10, %s16_s10 }
   0xa   :  { %p144_p3 = scmp.ne.s32.totalorder %s16_s10, %s143_s18  ;;  %p149_p5 = scmp.lt.s32.totalorder %s143_s18, %s143_s18 }
   0xc   :  { %p150_p6 = por %p149_p5, %p148_p4 }
   0xe   :  { %p151_p7 = pnand %p150_p6, %p144_p3 }
  0x10   :  { %154 = shalt.err (!%p151_p7)
}
  0x11   :  { %s206_s19 = smov 128   ;;  %s207_s20 = smov 8  }
  0x12   :  { %21 = dma.hbm_to_vmem [thread:$0]  %s269_s0, 256, %s16_s10, [#allocation3], %s206_s19, %s206_s19, %s207_s20  }
  0x13   :  { %s208_s23 = smov [#allocation5]   ;;  %s155_s27 = scalar_lea.hbm %s270_s1, 256 }
  0x14   :  { %s27_s24 = sshll.u32 %s208_s23, 4  ;;  %p156_p8 = scmp.ne.s32.totalorder %s270_s1, %s155_s27  ;;  %s28_s24 = int_to_ptr.vmem [resolvable:$true] %s27_s24 }
  0x15   :  { %p159_p9 = scmp.lt.u32.totalorder %s155_s27, %s270_s1 }
  0x17   :  { %p161_p10 = pnand %p159_p9, %p156_p8 }
  0x19   :  { %164 = shalt.err (!%p161_p10)
}
  0x1a   :  { %s165_s4 = scalar_lea.vmem %s28_s24, 256  ;;  %p170_p12 = scmp.lt.s32.totalorder %s28_s24, %s28_s24 }
  0x1b   :  { %p166_p11 = scmp.ne.s32.totalorder %s28_s24, %s165_s4  ;;  %p171_p13 = scmp.lt.s32.totalorder %s165_s4, %s165_s4 }
  0x1d   :  { %p172_p0 = por %p171_p13, %p170_p12 }
  0x1f   :  { %p173_p1 = pnand %p172_p0, %p166_p11 }
  0x21   :  { %176 = shalt.err (!%p173_p1)
}
  0x22   :  { %33 = dma.hbm_to_vmem [thread:$0]  %s270_s1, 256, %s28_s24, [#allocation6], %s206_s19, %s206_s19, %s207_s20  }
  0x23   :  { %199 = dma.done.wait [#allocation3], 256  }
  0x24   :  { %200 = vsyncadd [#allocation3], 4294967040 }
  0x25   :  { %201 = dma.done.wait [#allocation6], 256  }
  0x26   :  { %202 = vsyncadd [#allocation6], 4294967040  ;;  %vm44_vm0 = vcmask 261120   ;;  %v40_v0 = vld [vmem:[#allocation2] sm:$0xff]  ;;  %v41_v1 = vld [vmem:[#allocation2 + $0x8] sm:$0xff]  ;;  %vm87_vm1 = vcmask 7168  }
  0x27   :  { %v45_v2 = vsel %vm44_vm0, %v40_v0, -inf  ;;  %v48_v3 = vsel %vm44_vm0, %v41_v1, -inf  ;;  %v42_v4 = vld [vmem:[#allocation5] sm:$0xff]  ;;  %v43_v17 = vld [vmem:[#allocation5 + $0x8] sm:$0xff]  ;;  %s209_s1 = smov [#allocation7]  }
  0x28   :  { %46 = vmax.xlane.f32.xlu0 %v45_v2  ;;  %v69_v5 = vsel %vm44_vm0, %v42_v4, 0.0  ;;  %v77_v6 = vmul.f32 %v42_v4, %v40_v0  ;;  %v72_v19 = vsel %vm44_vm0, %v43_v17, 0.0  ;;  %v78_v20 = vmul.f32 %v43_v17, %v41_v1  ;;  %s108_s6 = sshll.u32 %s209_s1, 4  ;;  %s109_s6 = int_to_ptr.vmem [resolvable:$true] %s108_s6 }
  0x29   :  { %s177_s8 = scalar_lea.vmem %s109_s6, 128  ;;  %p182_p3 = scmp.lt.s32.totalorder %s109_s6, %s109_s6 }
  0x2a   :  { %v79_v7 = vsel %vm44_vm0, %v77_v6, 0.0  ;;  %v82_v21 = vsel %vm44_vm0, %v78_v20, 0.0  ;;  %p178_p2 = scmp.ne.s32.totalorder %s109_s6, %s177_s8  ;;  %p183_p4 = scmp.lt.s32.totalorder %s177_s8, %s177_s8 }
  0x2c   :  { %49 = vmax.xlane.f32.xlu0 %v48_v3  ;;  %p184_p5 = por %p183_p4, %p182_p3 }
  0x2e   :  { %p185_p6 = pnand %p184_p5, %p178_p2 }
  0x30   :  { %70 = vadd.xlane.f32.xlu0 %v69_v5 }
  0x34   :  { %80 = vadd.xlane.f32.xlu0 %v79_v7 }
  0xb5   :  { %v47_v8 = vpop.xlane.xlu0 %46 }
  0xb6   :  { %v51_v9 = vsub.f32 %v40_v0, %v47_v8 }
  0xb8   :  { %v53_v10 = vmul.f32 1.442695, %v51_v9 }
  0xb9   :  { %v50_v11 = vpop.xlane.xlu0 %49 }
  0xba   :  { %125 = vpow2.f32 %v53_v10  ;;  %v52_v12 = vsub.f32 %v41_v1, %v50_v11 }
  0xbc   :  { %v55_v13 = vmul.f32 1.442695, %v52_v12 }
  0xbd   :  { %v71_v25 = vpop.xlane.xlu0 %70 }
  0xbe   :  { %127 = vpow2.f32 %v55_v13 }
  0xc1   :  { %v81_v32 = vpop.xlane.xlu0 %80 }
  0xc4   :  { %v126_v14 = vpop.eup %125 }
  0xc5   :  { %v57_v15 = vsel %vm44_vm0, %v126_v14, 0.0 }
  0xc6   :  { %58 = vadd.xlane.f32.xlu1 %v57_v15 }
  0xc8   :  { %v128_v16 = vpop.eup %127 }
  0xc9   :  { %v60_v18 = vsel %vm44_vm0, %v128_v16, 0.0 }
  0xca   :  { %61 = vadd.xlane.f32.xlu1 %v60_v18 }
  0xce   :  { %73 = vadd.xlane.f32.xlu1 %v72_v19 }
  0xd2   :  { %83 = vadd.xlane.f32.xlu1 %v82_v21 }
 0x153   :  { %v59_v22 = vpop.xlane.xlu1 %58 }
 0x154   :  { %129 = vlog2.f32 %v59_v22 }
 0x157   :  { %v62_v23 = vpop.xlane.xlu1 %61 }
 0x158   :  { %131 = vlog2.f32 %v62_v23 }
 0x15b   :  { %v74_v27 = vpop.xlane.xlu1 %73 }
 0x15e   :  { %v130_v24 = vpop.eup %129 }
 0x15f   :  { %v64_v26 = vmul.f32 0.6931472, %v130_v24  ;;  %v84_v34 = vpop.xlane.xlu1 %83 }
 0x161   :  { %v67_v28 = vadd.f32 %v64_v26, %v47_v8 }
 0x162   :  { %v132_v29 = vpop.eup %131 }
 0x163   :  { %v66_v30 = vmul.f32 0.6931472, %v132_v29  ;;  %v75_v31 = vmul.f32 %v71_v25, %v67_v28 }
 0x165   :  { %v68_v33 = vadd.f32 %v66_v30, %v50_v11  ;;  %v85_v36 = vsub.f32 %v75_v31, %v81_v32 }
 0x167   :  { %v76_v35 = vmul.f32 %v74_v27, %v68_v33  ;;  %v88_v38 = vsel %vm87_vm1, %v85_v36, 0.0 }
 0x169   :  { %v86_v37 = vsub.f32 %v76_v35, %v84_v34 }
 0x16b   :  { %v89_v39 = vsel %vm87_vm1, %v86_v37, 0.0 }
 0x16c   :  { %v90_v40 = vadd.f32 %v89_v39, %v88_v38 }
 0x16e   :  { %91 = vadd.xlane.f32.xlu0 %v90_v40 }
 0x1fb   :  { %v92_v41 = vpop.xlane.xlu0 %91 }
 0x1fc   :  { %v93_v42 = vrot.slane %v92_v41, 4 }
 0x1fe   :  { %v94_v43 = vadd.f32 %v93_v42, %v92_v41 }
 0x200   :  { %v95_v44 = vrot.slane %v94_v43, 2 }
 0x202   :  { %v96_v45 = vadd.f32 %v95_v44, %v94_v43 }
 0x204   :  { %v97_v46 = vrot.slane %v96_v45, 1 }
 0x206   :  { %v98_v47 = vadd.f32 %v97_v46, %v96_v45 }
 0x208   :  { %118 = vpush %v98_v47 }
 0x239   :  { %s119_s7 = spop %118 }
 0x23a   :  { %v100_v48 = vstv %s119_s7 }
 0x23b   :  { %101 = vst [vmem:[#allocation7] sm:$0xff] %v100_v48 }
 0x23c   :  { %188 = shalt.err (!%p185_p6)
}
 0x23d   :  { %s189_s11 = scalar_lea.hbm %s271_s2, 128 }
 0x23e   :  { %p190_p7 = scmp.ne.s32.totalorder %s271_s2, %s189_s11  ;;  %p193_p8 = scmp.lt.u32.totalorder %s189_s11, %s271_s2 }
 0x240   :  { %p195_p9 = pnand %p193_p8, %p190_p7 }
 0x242   :  { %198 = shalt.err (!%p195_p9)
}
 0x243   :  { %111 = dma.vmem_to_hbm [thread:$0]  %s109_s6, 128, %s271_s2, [#allocation4]  }
 0x244   :  { %203 = dma.done.wait [#allocation4], 128  }
 0x245   :  { %204 = vsyncadd [#allocation4], 4294967168 }
 0x246   :  { %115 = vsyncpa [#allocation3], 1 }
 0x247   :  { %116 = vsyncpa [#allocation6], 1 }
 0x248   :  { %117 = vsyncpa [#allocation4], 1 }

</bundles_post_ra>
